<compile_context>
chip_gen: v6e
topology: v6e:2x2x1
jax: 0.10.0
libtpu: 0.0.40
codegen_flags: <defaults>
</compile_context>

<pallas_src>
import functools

import jax
import jax.numpy as jnp
from jax.experimental import pallas as pl
from jax.experimental.pallas import tpu as pltpu


def _round_up(x, m):
    return ((x + m - 1) // m) * m


# ---------------------------------------------------------------------------
# Stage 1: text embeddings (computed exactly once, reused by every image tile).
# ---------------------------------------------------------------------------
def text_embed_kernel(txt_ref, wtxt_ref, out_ref, *, inv_temp):
    # bf16 features/weights -> MXU, f32 accumulation.
    txt_e = jnp.dot(txt_ref[...], wtxt_ref[...],
                    preferred_element_type=jnp.float32)           # [T_pad, D]
    # L2-normalize rows; eps keeps zero-padded rows finite (they stay 0).
    # 1/temperature is folded into this per-row scale so the image path does
    # not need it at all.
    scale = jax.lax.rsqrt(
        jnp.sum(txt_e * txt_e, axis=-1, keepdims=True) + 1e-12)
    out_ref[...] = txt_e * (scale * inv_temp)


# ---------------------------------------------------------------------------
# Stage 2: per-B-tile image projection + similarity + softmax over labels.
# ---------------------------------------------------------------------------
def image_probs_kernel(img_ref, wimg_ref, txte_ref, out_ref, *, n_text):
    # Image projection (bf16 MXU, f32 accumulate).
    img_e = jnp.dot(img_ref[...], wimg_ref[...],
                    preferred_element_type=jnp.float32)           # [TB, D]

    # Per-row L2 normalization ([TB,1] multiply).
    scale = jax.lax.rsqrt(
        jnp.sum(img_e * img_e, axis=-1, keepdims=True) + 1e-12)
    img_e = img_e * scale

    # logits_per_image = img_e @ txt_e.T without materializing a transpose:
    # contract the shared D axis of both operands directly on the MXU.
    logits = jax.lax.dot_general(
        img_e, txte_ref[...],
        dimension_numbers=(((1,), (1,)), ((), ())),
        preferred_element_type=jnp.float32)                       # [TB, T_pad]

    # Mask padded label columns so they do not contribute to softmax(dim=1).
    col = jax.lax.broadcasted_iota(jnp.int32, logits.shape, 1)
    logits = jnp.where(col < n_text, logits, -1e30)

    # Numerically stable softmax over the label axis.
    m = jnp.max(logits, axis=-1, keepdims=True)
    e = jnp.exp(logits - m)
    denom = jnp.sum(e, axis=-1, keepdims=True)
    out_ref[...] = e * pl.reciprocal(denom, approx=False)


# ---------------------------------------------------------------------------
# Wrapper
# ---------------------------------------------------------------------------
def align_clip_forward(img_feats, txt_feats, w_img, w_txt, temperature):
    """Returns softmax(logits_per_image, dim=1) as [B, T] float32."""
    B, Hi = img_feats.shape
    T, Ht = txt_feats.shape
    D = w_img.shape[1]
    assert w_txt.shape == (Ht, D)

    # Lane-dense output: pad T to a multiple of 128 (full-rate vst); pad B to a
    # sublane multiple / tile size.
    T_pad = _round_up(T, 128)
    B_pad = _round_up(B, 8)
    if B_pad > 128:
        B_pad = _round_up(B, 128)
        TB = 128
    else:
        TB = B_pad

    img_p = jnp.pad(img_feats, ((0, B_pad - B), (0, 0)))
    txt_p = jnp.pad(txt_feats, ((0, T_pad - T), (0, 0)))

    vmem = pl.BlockSpec(memory_space=pltpu.MemorySpace.VMEM)

    # --- Stage 1: hoisted text embeddings (with 1/temperature folded in). ---
    txt_e = pl.pallas_call(
        functools.partial(text_embed_kernel,
                          inv_temp=float(1.0 / temperature)),
        out_shape=jax.ShapeDtypeStruct((T_pad, D), jnp.float32),
        in_specs=[vmem, vmem],
        out_specs=vmem,
    )(txt_p, w_txt)

    # --- Stage 2: B-tiled grid; B axis marked parallel (megacore sharding). ---
    probs = pl.pallas_call(
        functools.partial(image_probs_kernel, n_text=T),
        out_shape=jax.ShapeDtypeStruct((B_pad, T_pad), jnp.float32),
        grid=(B_pad // TB,),
        in_specs=[
            pl.BlockSpec((TB, Hi), lambda i: (i, 0)),      # image feature tile
            pl.BlockSpec((Hi, D), lambda i: (0, 0)),       # W_img (resident)
            pl.BlockSpec((T_pad, D), lambda i: (0, 0)),    # txt_e (resident)
        ],
        out_specs=pl.BlockSpec((TB, T_pad), lambda i: (i, 0)),
        compiler_params=pltpu.CompilerParams(
            dimension_semantics=("parallel",)),
    )(img_p, w_img, txt_e)

    return probs[:B, :T]


def _reference(img_feats, txt_feats, w_img, w_txt, temperature):
    img_e = img_feats.astype(jnp.float32) @ w_img.astype(jnp.float32)
    txt_e = txt_feats.astype(jnp.float32) @ w_txt.astype(jnp.float32)
    img_e = img_e / jnp.linalg.norm(img_e, axis=-1, keepdims=True)
    txt_e = txt_e / jnp.linalg.norm(txt_e, axis=-1, keepdims=True)
    logits = img_e @ txt_e.T / temperature
    return jax.nn.softmax(logits, axis=1)


if __name__ == "__main__":
    # Small synthetic shapes consistent with the ALIGN contrastive head:
    #   B images, T candidate text labels, pooled feature dims Hi/Ht,
    #   shared embedding dim D (lane-aligned).
    B, T = 4, 8
    Hi, Ht, D = 32, 32, 128
    temperature = 1.0  # ALIGN config temperature_init_value

    key = jax.random.PRNGKey(0)
    k_img, k_txt, k_wi, k_wt = jax.random.split(key, 4)

    # "Pooled" backbone features (stand-ins for EfficientNet / BERT pooled
    # outputs); bf16 to feed the MXU at full rate, as the backbones would emit.
    img_feats = jax.random.normal(k_img, (B, Hi), dtype=jnp.float32).astype(jnp.bfloat16)
    txt_feats = jax.random.normal(k_txt, (T, Ht), dtype=jnp.float32).astype(jnp.bfloat16)

    # Deterministic projection weights (synthetic, not a checkpoint load).
    w_img = (jax.random.normal(k_wi, (Hi, D), dtype=jnp.float32) * (Hi ** -0.5)).astype(jnp.bfloat16)
    w_txt = (jax.random.normal(k_wt, (Ht, D), dtype=jnp.float32) * (Ht ** -0.5)).astype(jnp.bfloat16)

    probs = align_clip_forward(img_feats, txt_feats, w_img, w_txt, temperature)
    probs = jax.block_until_ready(probs)

    ref = _reference(img_feats, txt_feats, w_img, w_txt, temperature)
    assert probs.shape == (B, T)
    assert jnp.allclose(jnp.sum(probs, axis=1), 1.0, atol=1e-5)
    assert jnp.allclose(probs, ref, atol=2e-4, rtol=2e-4)

    print("KERNEL_OK")
</pallas_src>

<mosaic_0001>
module attributes {stable_mosaic.version = 11 : i64} {
  func.func @text_embed_kernel(%arg0: memref<128x32xbf16, #tpu.memory_space<vmem>>, %arg1: memref<32x128xbf16, #tpu.memory_space<vmem>>, %arg2: memref<128x128xf32, #tpu.memory_space<vmem>>) attributes {dimension_semantics = [], scalar_prefetch = 0 : i64, scratch_operands = 0 : i64, tpu.core_type = #tpu.core_type<tc>} {
    %c0 = arith.constant 0 : index
    %c0_0 = arith.constant 0 : index
    %0 = vector.load %arg0[%c0, %c0_0] : memref<128x32xbf16, #tpu.memory_space<vmem>>, vector<128x32xbf16>
    %c0_1 = arith.constant 0 : index
    %c0_2 = arith.constant 0 : index
    %1 = vector.load %arg1[%c0_1, %c0_2] : memref<32x128xbf16, #tpu.memory_space<vmem>>, vector<32x128xbf16>
    %cst = arith.constant dense<0.000000e+00> : vector<128x128xf32>
    %2 = tpu.matmul %0, %1, %cst {dimension_numbers = #tpu.dot_dimension_numbers<[1], [0], [0], [1], [0, 0, 1, 1], [], []>} : vector<128x32xbf16>, vector<32x128xbf16>, vector<128x128xf32> -> vector<128x128xf32>
    %3 = arith.mulf %2, %2 : vector<128x128xf32>
    %cst_3 = arith.constant dense<0.000000e+00> : vector<128xf32>
    %4 = vector.multi_reduction <add>, %3, %cst_3 [1] : vector<128x128xf32> to vector<128xf32>
    %5 = vector.shape_cast %4 : vector<128xf32> to vector<128x1xf32>
    %cst_4 = arith.constant 9.99999996E-13 : f32
    %6 = vector.broadcast %cst_4 : f32 to vector<128x1xf32>
    %7 = arith.addf %5, %6 : vector<128x1xf32>
    %8 = math.rsqrt %7 : vector<128x1xf32>
    %cst_5 = arith.constant 1.000000e+00 : f32
    %9 = vector.broadcast %cst_5 : f32 to vector<128x1xf32>
    %10 = arith.mulf %8, %9 : vector<128x1xf32>
    %11 = vector.broadcast %10 : vector<128x1xf32> to vector<128x128xf32>
    %12 = arith.mulf %2, %11 : vector<128x128xf32>
    %c0_6 = arith.constant 0 : index
    %c0_7 = arith.constant 0 : index
    %13 = vector.load %arg2[%c0_6, %c0_7] : memref<128x128xf32, #tpu.memory_space<vmem>>, vector<128x128xf32>
    tpu.vector_store %arg2[%c0_6, %c0_7], %12 {strides = array<i32>} : memref<128x128xf32, #tpu.memory_space<vmem>>, vector<128x128xf32>,
    return
  }
}

</mosaic_0001>

<bundles_post_ra>
// kernel: tpu_custom_call.1
= control target key start
LH: loop header
LB: loop body
LE: loop exit
PB: predicated region body
PF: predicated region fallthrough
CT: control target
= control target key end

     0   :  { %vm85_vm0 = vcmask 261120   ;;  %s593_s0 = inlined_call_operand.vmem [shape: bf16[128,32], index: 0, kind: input, shape index: {}]   ;;  %s594_s1 = inlined_call_operand.vmem [shape: bf16[32,128], index: 1, kind: input, shape index: {}]   ;;  %s595_s2 = inlined_call_operand.hbm [shape: f32[128,128], index: 2, kind: output, shape index: {}]  }
   0x1   :  { %v390_v0 = vld [vmem:[%s594_s1 + $0x8] sm:$0xff]   ;;  %v391_v1 = vld [vmem:[%s594_s1] sm:$0xff]   ;;  %v396_v6 = vld [vmem:[%s593_s0 + $0x10] sm:$0xff]  }
   0x2   :  { %363 = vmatprep.subr.bf16.mxu0 %v390_v0  ;;  %383 = vmatprep.subr.bf16.mxu1 %v390_v0  ;;  %v392_v2 = vld [vmem:[%s593_s0] sm:$0xff]   ;;  %v394_v4 = vld [vmem:[%s593_s0 + $0x8] sm:$0xff]   ;;  %v398_v7 = vld [vmem:[%s593_s0 + $0x30] sm:$0xff]  }
   0x3   :  { %364 = vmatpush3.bf16.msra.mxu0 %v390_v0  ;;  %385 = vmatpush3.bf16.msra.mxu1 %v390_v0  ;;  %v393_v3 = vld [vmem:[%s593_s0 + $0x20] sm:$0xff]   ;;  %v395_v5 = vld [vmem:[%s593_s0 + $0x28] sm:$0xff]  }
   0x4   :  { %365 = vmatprep.subr.bf16.mxu0 %v391_v1  ;;  %384 = vmatprep.subr.bf16.mxu1 %v391_v1 }
   0x5   :  { %367 = vmatprep.mubr.msk.bf16.mxu0 %vm85_vm0, %v392_v2  ;;  %375 = vmatprep.mubr.msk.bf16.mxu1 %vm85_vm0, %v393_v3 }
   0x7   :  { %366 = vmatpush3.bf16.msra.mxu0 %v391_v1  ;;  %386 = vmatpush3.bf16.msra.mxu1 %v391_v1 }
   0xa   :  { %368 = vmatmul.mubr.msk.bf16.vlgmr.msra.gmra.mxu0 %vm85_vm0, %v394_v4  ;;  %376 = vmatmul.mubr.msk.bf16.vlgmr.msra.gmra.mxu1 %vm85_vm0, %v395_v5 }
   0xb   :  { %7 = vsyncpa [#allocation3], 0  ;;  %371 = vmatprep.mubr.msk.bf16.mxu0 %vm85_vm0, %v396_v6  ;;  %379 = vmatprep.mubr.msk.bf16.mxu1 %vm85_vm0, %v398_v7  ;;  %v397_v8 = vld [vmem:[%s593_s0 + $0x18] sm:$0xff]  }
   0xc   :  { %v399_v9 = vld [vmem:[%s593_s0 + $0x38] sm:$0xff]   ;;  %s454_s0 = smov [#allocation2]  }
   0xd   :  { %s324_s28 = sshll.u32 %s454_s0, 4  ;;  %s325_s28 = int_to_ptr.vmem [resolvable:$true] %s324_s28 }
   0xe   :  { %s432_s29 = scalar_lea.vmem %s325_s28, 2048  ;;  %p437_p1 = scmp.lt.s32.totalorder %s325_s28, %s325_s28 }
   0xf   :  { %p433_p0 = scmp.ne.s32.totalorder %s325_s28, %s432_s29  ;;  %p438_p2 = scmp.lt.s32.totalorder %s432_s29, %s432_s29 }
  0x11   :  { %p439_p3 = por %p438_p2, %p437_p1 }
  0x12   :  { %372 = vmatmul.mubr.msk.bf16.gmra.mxu0 %vm85_vm0, %v397_v8  ;;  %380 = vmatmul.mubr.msk.bf16.gmra.mxu1 %vm85_vm0, %v399_v9 }
  0x13   :  { %p440_p4 = pnand %p439_p3, %p433_p0 }
  0xca   :  { %v510_v10 = vpop.f32.mrf.mxu0  ;;  %v512_v11 = vpop.f32.mrf.mxu1 }
  0xcb   :  { %v217_v12 = vmul.f32 %v512_v11, %v512_v11  ;;  %v209_v13 = vmul.f32 %v510_v10, %v510_v10 }
  0xcc   :  { %v518_v14 = vpop.f32.mrf.mxu0  ;;  %v520_v15 = vpop.f32.mrf.mxu1 }
  0xcd   :  { %243 = vadd.xlane.f32.xlu0 %v217_v12  ;;  %227 = vadd.xlane.f32.xlu1 %v209_v13  ;;  %v207_v18 = vmul.f32 %v518_v14, %v518_v14  ;;  %v215_v23 = vmul.f32 %v520_v15, %v520_v15 }
  0xce   :  { %v522_v16 = vpop.f32.mrf.mxu0  ;;  %v524_v17 = vpop.f32.mrf.mxu1 }
  0xcf   :  { %v210_v19 = vmul.f32 %v522_v16, %v522_v16  ;;  %v218_v24 = vmul.f32 %v524_v17, %v524_v17 }
  0xd0   :  { %v530_v20 = vpop.f32.mrf.mxu0  ;;  %v532_v21 = vpop.f32.mrf.mxu1 }
  0xd1   :  { %223 = vadd.xlane.f32.xlu0 %v207_v18  ;;  %229 = vadd.xlane.f32.xlu1 %v210_v19  ;;  %v216_v27 = vmul.f32 %v532_v21, %v532_v21  ;;  %v208_v28 = vmul.f32 %v530_v20, %v530_v20 }
  0xd2   :  { %v534_v22 = vpop.f32.mrf.mxu0  ;;  %v542_v26 = vpop.f32.mrf.mxu1 }
  0xd3   :  { %v213_v31 = vmul.f32 %v534_v22, %v534_v22  ;;  %v221_v40 = vmul.f32 %v542_v26, %v542_v26 }
  0xd4   :  { %v540_v25 = vpop.f32.mrf.mxu0  ;;  %v550_v30 = vpop.f32.mrf.mxu1 }
  0xd5   :  { %239 = vadd.xlane.f32.xlu0 %v215_v23  ;;  %245 = vadd.xlane.f32.xlu1 %v218_v24  ;;  %v211_v36 = vmul.f32 %v540_v25, %v540_v25  ;;  %v219_v39 = vmul.f32 %v550_v30, %v550_v30 }
  0xd6   :  { %v548_v29 = vpop.f32.mrf.mxu0  ;;  %v558_v34 = vpop.f32.mrf.mxu1 }
  0xd7   :  { %v214_v32 = vmul.f32 %v548_v29, %v548_v29  ;;  %v222_v41 = vmul.f32 %v558_v34, %v558_v34 }
  0xd8   :  { %v556_v33 = vpop.f32.mrf.mxu0  ;;  %v564_v37 = vpop.f32.mrf.mxu1 }
  0xd9   :  { %241 = vadd.xlane.f32.xlu1 %v216_v27  ;;  %225 = vadd.xlane.f32.xlu0 %v208_v28  ;;  %v212_v35 = vmul.f32 %v556_v33, %v556_v33  ;;  %v220_v38 = vmul.f32 %v564_v37, %v564_v37 }
  0xdd   :  { %235 = vadd.xlane.f32.xlu0 %v213_v31  ;;  %237 = vadd.xlane.f32.xlu1 %v214_v32 }
  0xe1   :  { %231 = vadd.xlane.f32.xlu0 %v211_v36  ;;  %233 = vadd.xlane.f32.xlu1 %v212_v35 }
  0xe5   :  { %247 = vadd.xlane.f32.xlu0 %v219_v39  ;;  %249 = vadd.xlane.f32.xlu1 %v220_v38 }
  0xe9   :  { %251 = vadd.xlane.f32.xlu0 %v221_v40  ;;  %253 = vadd.xlane.f32.xlu1 %v222_v41 }
 0x156   :  { %v244_v42 = vpop.xlane.xlu0 %243  ;;  %v228_v43 = vpop.xlane.xlu1 %227 }
 0x157   :  { %v265_v44 = vadd.f32 1e-12, %v244_v42  ;;  %v257_v45 = vadd.f32 1e-12, %v228_v43 }
 0x159   :  { %400 = vrsqrt.f32 %v265_v44 }
 0x15a   :  { %402 = vrsqrt.f32 %v257_v45  ;;  %v224_v46 = vpop.xlane.xlu0 %223  ;;  %v230_v47 = vpop.xlane.xlu1 %229 }
 0x15b   :  { %v255_v48 = vadd.f32 1e-12, %v224_v46  ;;  %v258_v49 = vadd.f32 1e-12, %v230_v47 }
 0x15d   :  { %404 = vrsqrt.f32 %v255_v48 }
 0x15e   :  { %406 = vrsqrt.f32 %v258_v49  ;;  %v240_v50 = vpop.xlane.xlu0 %239  ;;  %v246_v51 = vpop.xlane.xlu1 %245 }
 0x15f   :  { %v263_v52 = vadd.f32 1e-12, %v240_v50  ;;  %v266_v53 = vadd.f32 1e-12, %v246_v51 }
 0x161   :  { %408 = vrsqrt.f32 %v263_v52 }
 0x162   :  { %410 = vrsqrt.f32 %v266_v53  ;;  %v242_v54 = vpop.xlane.xlu1 %241  ;;  %v226_v55 = vpop.xlane.xlu0 %225 }
 0x163   :  { %v264_v56 = vadd.f32 1e-12, %v242_v54  ;;  %v256_v57 = vadd.f32 1e-12, %v226_v55 }
 0x165   :  { %412 = vrsqrt.f32 %v264_v56 }
 0x166   :  { %v401_v58 = vpop.eup %400  ;;  %414 = vrsqrt.f32 %v256_v57  ;;  %v236_v59 = vpop.xlane.xlu0 %235 }
 0x167   :  { %v238_v60 = vpop.xlane.xlu1 %237  ;;  %v403_v61 = vpop.eup %402  ;;  %v297_v62 = vmul.f32 %v401_v58, %v512_v11  ;;  %v261_v63 = vadd.f32 1e-12, %v236_v59 }
 0x168   :  { %v262_v0 = vadd.f32 1e-12, %v238_v60  ;;  %v289_v1 = vmul.f32 %v403_v61, %v510_v10 }
 0x169   :  { %313 = vst [vmem:[#allocation2 + $0x50] sm:$0xff] %v297_v62  ;;  %416 = vrsqrt.f32 %v261_v63 }
 0x16a   :  { %v405_v2 = vpop.eup %404  ;;  %305 = vst [vmem:[#allocation2 + $0x10] sm:$0xff] %v289_v1  ;;  %418 = vrsqrt.f32 %v262_v0  ;;  %v232_v3 = vpop.xlane.xlu0 %231 }
 0x16b   :  { %v234_v4 = vpop.xlane.xlu1 %233  ;;  %v407_v5 = vpop.eup %406  ;;  %v287_v6 = vmul.f32 %v405_v2, %v518_v14  ;;  %v259_v7 = vadd.f32 1e-12, %v232_v3 }
 0x16c   :  { %v260_v8 = vadd.f32 1e-12, %v234_v4  ;;  %v290_v9 = vmul.f32 %v407_v5, %v522_v16 }
 0x16d   :  { %303 = vst [vmem:[#allocation2] sm:$0xff] %v287_v6  ;;  %420 = vrsqrt.f32 %v259_v7 }
 0x16e   :  { %v409_v11 = vpop.eup %408  ;;  %306 = vst [vmem:[#allocation2 + $0x18] sm:$0xff] %v290_v9  ;;  %422 = vrsqrt.f32 %v260_v8  ;;  %v248_v10 = vpop.xlane.xlu0 %247 }
 0x16f   :  { %v250_v12 = vpop.xlane.xlu1 %249  ;;  %v411_v13 = vpop.eup %410  ;;  %v295_v18 = vmul.f32 %v409_v11, %v520_v15  ;;  %v267_v19 = vadd.f32 1e-12, %v248_v10 }
 0x170   :  { %v268_v23 = vadd.f32 1e-12, %v250_v12  ;;  %v298_v24 = vmul.f32 %v411_v13, %v524_v17 }
 0x171   :  { %311 = vst [vmem:[#allocation2 + $0x40] sm:$0xff] %v295_v18  ;;  %424 = vrsqrt.f32 %v267_v19 }
 0x172   :  { %v413_v14 = vpop.eup %412  ;;  %314 = vst [vmem:[#allocation2 + $0x58] sm:$0xff] %v298_v24  ;;  %426 = vrsqrt.f32 %v268_v23  ;;  %v252_v16 = vpop.xlane.xlu0 %251 }
 0x173   :  { %v254_v27 = vpop.xlane.xlu1 %253  ;;  %v415_v28 = vpop.eup %414  ;;  %v296_v31 = vmul.f32 %v413_v14, %v532_v21  ;;  %v269_v32 = vadd.f32 1e-12, %v252_v16 }
 0x174   :  { %v270_v35 = vadd.f32 1e-12, %v254_v27  ;;  %v288_v36 = vmul.f32 %v415_v28, %v530_v20 }
 0x175   :  { %312 = vst [vmem:[#allocation2 + $0x48] sm:$0xff] %v296_v31  ;;  %428 = vrsqrt.f32 %v269_v32 }
 0x176   :  { %v417_v15 = vpop.eup %416  ;;  %304 = vst [vmem:[#allocation2 + $0x8] sm:$0xff] %v288_v36  ;;  %430 = vrsqrt.f32 %v270_v35 }
 0x177   :  { %v419_v17 = vpop.eup %418  ;;  %v293_v38 = vmul.f32 %v417_v15, %v534_v22 }
 0x178   :  { %v294_v39 = vmul.f32 %v419_v17, %v548_v29 }
 0x179   :  { %309 = vst [vmem:[#allocation2 + $0x30] sm:$0xff] %v293_v38 }
 0x17a   :  { %v421_v40 = vpop.eup %420  ;;  %310 = vst [vmem:[#allocation2 + $0x38] sm:$0xff] %v294_v39 }
 0x17b   :  { %v423_v41 = vpop.eup %422  ;;  %v291_v21 = vmul.f32 %v421_v40, %v540_v25 }
 0x17c   :  { %v292_v42 = vmul.f32 %v423_v41, %v556_v33 }
 0x17d   :  { %307 = vst [vmem:[#allocation2 + $0x20] sm:$0xff] %v291_v21 }
 0x17e   :  { %v425_v20 = vpop.eup %424  ;;  %308 = vst [vmem:[#allocation2 + $0x28] sm:$0xff] %v292_v42 }
 0x17f   :  { %v427_v43 = vpop.eup %426  ;;  %v299_v44 = vmul.f32 %v425_v20, %v550_v30 }
 0x180   :  { %v300_v45 = vmul.f32 %v427_v43, %v564_v37 }
 0x181   :  { %315 = vst [vmem:[#allocation2 + $0x60] sm:$0xff] %v299_v44 }
 0x182   :  { %v429_v22 = vpop.eup %428  ;;  %316 = vst [vmem:[#allocation2 + $0x68] sm:$0xff] %v300_v45 }
 0x183   :  { %v431_v29 = vpop.eup %430  ;;  %v301_v46 = vmul.f32 %v429_v22, %v542_v26 }
 0x184   :  { %v302_v25 = vmul.f32 %v431_v29, %v558_v34 }
 0x185   :  { %317 = vst [vmem:[#allocation2 + $0x70] sm:$0xff] %v301_v46 }
 0x186   :  { %318 = vst [vmem:[#allocation2 + $0x78] sm:$0xff] %v302_v25 }
 0x187   :  { %443 = shalt.err (!%p440_p4)
}
 0x188   :  { %s455_s30 = smov 128   ;;  %s456_s3 = smov 8  }
 0x189   :  { %330 = dma.vmem_to_hbm [thread:$0]  %s325_s28, 2048, %s595_s2, [#allocation3], %s455_s30, %s455_s30, %s456_s3  }
 0x18a   :  { %452 = dma.done.wait [#allocation3], 2048  }
 0x18b   :  { %453 = vsyncadd [#allocation3], 4294965248 }
 0x18c   :  { %334 = vsyncpa [#allocation3], 1 }

</bundles_post_ra>
